<compile_context>
chip_gen: v7x
topology: tpu7x:2x2x1
jax: 0.10.0
libtpu: 0.0.40
codegen_flags: <defaults>
</compile_context>

<pallas_src>
import jax
import jax.numpy as jnp
from jax.experimental import pallas as pl
from jax.experimental.pallas import tpu as pltpu


def _round_up(x, m):
    return (x + m - 1) // m * m


def _choose_batch_tile(B, tile_batch):
    """Pick the batch tile tb and padded batch pb.

    tb is a multiple of 16 (bf16 sublane packing), a multiple of 128 when large
    (fills the MXU M dimension), capped by tile_batch, and chosen so the grid
    has >= 2 steps whenever B allows (v7x megacore sharding of the batch axis).
    """
    ntiles = max(2, pl.cdiv(B, tile_batch))
    tb = pl.cdiv(B, ntiles)
    tb = _round_up(tb, 128 if tb >= 128 else 16)
    tb = min(tb, _round_up(tile_batch, 128))
    pb = _round_up(B, tb)
    return tb, pb


def _rt_pred_kernel(
    nn_u_ref, nn_i_ref, mf_u_ref, mf_i_ref, score_ref,
    w1u_ref, w1i_ref, w1s_ref, b1_ref,
    w2_ref, b2_ref,
    w3_ref, b3_ref,
    w4mf_ref, w4h_ref, b4_ref,
    out_ref,
):
    s = score_ref[...]                                        # (TB, 1) f32

    # fc1 on cat([nn_user_emb, nn_item_emb, score]) as two K=128 bf16 MXU
    # matmuls + the exact rank-1 score term + bias (f32 on the VPU).
    h = jnp.dot(nn_u_ref[...], w1u_ref[...],
                preferred_element_type=jnp.float32)           # (TB, 512)
    h = h + jnp.dot(nn_i_ref[...], w1i_ref[...],
                    preferred_element_type=jnp.float32)
    h = h + s * w1s_ref[...] + b1_ref[...]
    h = jnp.maximum(h, 0.0)                                   # ReLU (dropout = identity)

    # fc2 (bf16 MXU operands, f32 accumulate)
    h = jnp.dot(h.astype(jnp.bfloat16), w2_ref[...],
                preferred_element_type=jnp.float32) + b2_ref[...]
    h = jnp.maximum(h, 0.0)                                   # (TB, 256)

    # fc3
    h = jnp.dot(h.astype(jnp.bfloat16), w3_ref[...],
                preferred_element_type=jnp.float32) + b3_ref[...]
    h = jnp.maximum(h, 0.0)                                   # (TB, 32)

    # MF branch: upcast bf16 embeddings, elementwise product scaled by score (f32).
    mf_x = (mf_u_ref[...].astype(jnp.float32)
            * mf_i_ref[...].astype(jnp.float32) * s)          # (TB, 32)

    # neumf head on cat([mf_x, h]) -- exact split into two 32-wide matmuls.
    out = (jnp.dot(mf_x, w4mf_ref[...], preferred_element_type=jnp.float32)
           + jnp.dot(h, w4h_ref[...], preferred_element_type=jnp.float32)
           + b4_ref[...])                                     # (TB, 5)
    out_ref[...] = out.astype(out_ref.dtype)


def prepare_params(params):
    """One-time weight splits + bf16 casts (outside the per-call hot path)."""
    nn_dim = params["nn_usr_emb"].shape[-1]
    mf_dim = params["mf_usr_emb"].shape[-1]
    w1 = params["fc1_w"]                                      # (2*nn_dim + 1, 512)
    w4 = params["neumf_w"]                                    # (2*mf_dim, 5)
    return dict(
        nn_usr_emb=params["nn_usr_emb"].astype(jnp.bfloat16),
        nn_item_emb=params["nn_item_emb"].astype(jnp.bfloat16),
        mf_usr_emb=params["mf_usr_emb"].astype(jnp.bfloat16),
        mf_item_emb=params["mf_item_emb"].astype(jnp.bfloat16),
        w1u=w1[:nn_dim].astype(jnp.bfloat16),                 # (128, 512) bf16
        w1i=w1[nn_dim:2 * nn_dim].astype(jnp.bfloat16),       # (128, 512) bf16
        w1s=w1[2 * nn_dim:2 * nn_dim + 1],                    # (1, 512)  f32
        b1=params["fc1_b"][None, :],                          # (1, 512)
        w2=params["fc2_w"].astype(jnp.bfloat16),              # (512, 256) bf16
        b2=params["fc2_b"][None, :],                          # (1, 256)
        w3=params["fc3_w"].astype(jnp.bfloat16),              # (256, 32) bf16
        b3=params["fc3_b"][None, :],                          # (1, 32)
        w4mf=w4[:mf_dim],                                     # (32, 5) f32
        w4h=w4[mf_dim:],                                      # (32, 5) f32
        b4=params["neumf_b"][None, :],                        # (1, 5)
    )


def rt_pred_forward(prep, user, item, score, *, tile_batch=1024):
    """Forward pass. user/item: int32 (B,), score: float32 (B, 1). Returns (B, 5)."""
    B = user.shape[0]
    tb, pb = _choose_batch_tile(B, tile_batch)

    # Pad the tiny index/score arrays BEFORE the gathers so the gathered
    # activations come out already padded (no (B, 256)-sized pad copies).
    if pb != B:
        user_p = jnp.pad(user, (0, pb - B))                   # index 0 is valid
        item_p = jnp.pad(item, (0, pb - B))
        score_p = jnp.pad(score, ((0, pb - B), (0, 0)))
    else:
        user_p, item_p, score_p = user, item, score

    # --- glue: embedding gathers (plain JAX); no concatenate needed ---
    # TODO(synk): fuse the gathers into the kernel (scalar-prefetched indices +
    # manual DMA gather from HBM tables) to remove this HBM round trip.
    nn_u = prep["nn_usr_emb"][user_p]                         # (pb, 128) bf16
    nn_i = prep["nn_item_emb"][item_p]                        # (pb, 128) bf16
    mf_u = prep["mf_usr_emb"][user_p]                         # (pb, 32)  bf16
    mf_i = prep["mf_item_emb"][item_p]                        # (pb, 32)  bf16

    grid = (pb // tb,)

    def batch_spec(width):
        return pl.BlockSpec((tb, width), lambda i: (i, 0))

    def resident_spec(arr):                                   # same block every step
        return pl.BlockSpec(arr.shape, lambda i: (0, 0))

    weights = (prep["w1u"], prep["w1i"], prep["w1s"], prep["b1"],
               prep["w2"], prep["b2"],
               prep["w3"], prep["b3"],
               prep["w4mf"], prep["w4h"], prep["b4"])

    in_specs = ([batch_spec(nn_u.shape[-1]),
                 batch_spec(nn_i.shape[-1]),
                 batch_spec(mf_u.shape[-1]),
                 batch_spec(mf_i.shape[-1]),
                 batch_spec(1)]
                + [resident_spec(w) for w in weights])

    out = pl.pallas_call(
        _rt_pred_kernel,
        out_shape=jax.ShapeDtypeStruct((pb, 5), jnp.float32),
        grid=grid,
        in_specs=in_specs,
        out_specs=pl.BlockSpec((tb, 5), lambda i: (i, 0)),
        compiler_params=pltpu.CompilerParams(
            dimension_semantics=("parallel",)),
    )(nn_u, nn_i, mf_u, mf_i, score_p, *weights)

    out = out[:B]
    # Matches torch .squeeze(): drops any size-1 dims (no-op for B>1).
    return jnp.squeeze(out)


def init_params(key, num_users, num_items, nn_emb_dim=128, mf_emb_dim=32):
    ks = jax.random.split(key, 12)

    def linear(kw, kb, fan_in, fan_out):
        bound = 1.0 / jnp.sqrt(fan_in)
        w = jax.random.uniform(kw, (fan_in, fan_out), jnp.float32, -bound, bound)
        b = jax.random.uniform(kb, (fan_out,), jnp.float32, -bound, bound)
        return w, b

    fc1_w, fc1_b = linear(ks[4], ks[5], 2 * nn_emb_dim + 1, 512)
    fc2_w, fc2_b = linear(ks[6], ks[7], 512, 256)
    fc3_w, fc3_b = linear(ks[8], ks[9], 256, 32)
    neumf_w, neumf_b = linear(ks[10], ks[11], 2 * mf_emb_dim, 5)

    return dict(
        mf_usr_emb=jax.random.normal(ks[0], (num_users, mf_emb_dim), jnp.float32),
        mf_item_emb=jax.random.normal(ks[1], (num_items, mf_emb_dim), jnp.float32),
        nn_usr_emb=jax.random.normal(ks[2], (num_users, nn_emb_dim), jnp.float32),
        nn_item_emb=jax.random.normal(ks[3], (num_items, nn_emb_dim), jnp.float32),
        fc1_w=fc1_w, fc1_b=fc1_b,
        fc2_w=fc2_w, fc2_b=fc2_b,
        fc3_w=fc3_w, fc3_b=fc3_b,
        neumf_w=neumf_w, neumf_b=neumf_b,
    )


def _reference_forward(params, user, item, score):
    """Pure-JAX f32 reference mirroring the PyTorch forward (eval mode)."""
    mf_x = params["mf_usr_emb"][user] * params["mf_item_emb"][item] * score
    x = jnp.concatenate(
        [params["nn_usr_emb"][user], params["nn_item_emb"][item], score], axis=-1)
    x = jnp.maximum(x @ params["fc1_w"] + params["fc1_b"], 0.0)
    x = jnp.maximum(x @ params["fc2_w"] + params["fc2_b"], 0.0)
    x = jnp.maximum(x @ params["fc3_w"] + params["fc3_b"], 0.0)
    x = jnp.concatenate([mf_x, x], axis=-1)
    return jnp.squeeze(x @ params["neumf_w"] + params["neumf_b"])


if __name__ == "__main__":
    key = jax.random.PRNGKey(0)
    kp, ku, ki, ks = jax.random.split(key, 4)

    num_users, num_items, batch = 10, 12, 8
    params = init_params(kp, num_users, num_items)
    prep = prepare_params(params)

    user = jax.random.randint(ku, (batch,), 0, num_users, dtype=jnp.int32)
    item = jax.random.randint(ki, (batch,), 0, num_items, dtype=jnp.int32)
    score = jax.random.uniform(ks, (batch, 1), jnp.float32, 0.0, 5.0)

    fwd = jax.jit(rt_pred_forward)
    out = jax.block_until_ready(fwd(prep, user, item, score))

    ref = _reference_forward(params, user, item, score)
    assert out.shape == (batch, 5), out.shape
    # bf16 weights/embeddings in the MLP + MF branches -> bf16-level tolerance.
    assert jnp.allclose(out, ref, atol=7.5e-2, rtol=5e-2), (out, ref)

    print("KERNEL_OK")
</pallas_src>

<mosaic_0001>
module attributes {stable_mosaic.version = 11 : i64} {
  func.func @_rt_pred_kernel(%arg0: i32, %arg1: memref<16x128xbf16, #tpu.memory_space<vmem>>, %arg2: memref<16x128xbf16, #tpu.memory_space<vmem>>, %arg3: memref<16x32xbf16, #tpu.memory_space<vmem>>, %arg4: memref<16x32xbf16, #tpu.memory_space<vmem>>, %arg5: memref<16x1xf32, #tpu.memory_space<vmem>>, %arg6: memref<128x512xbf16, #tpu.memory_space<vmem>>, %arg7: memref<128x512xbf16, #tpu.memory_space<vmem>>, %arg8: memref<1x512xf32, #tpu.memory_space<vmem>>, %arg9: memref<1x512xf32, #tpu.memory_space<vmem>>, %arg10: memref<512x256xbf16, #tpu.memory_space<vmem>>, %arg11: memref<1x256xf32, #tpu.memory_space<vmem>>, %arg12: memref<256x32xbf16, #tpu.memory_space<vmem>>, %arg13: memref<1x32xf32, #tpu.memory_space<vmem>>, %arg14: memref<32x5xf32, #tpu.memory_space<vmem>>, %arg15: memref<32x5xf32, #tpu.memory_space<vmem>>, %arg16: memref<1x5xf32, #tpu.memory_space<vmem>>, %arg17: memref<16x5xf32, #tpu.memory_space<vmem>>) attributes {dimension_semantics = [#tpu.dimension_semantics<parallel>], iteration_bounds = array<i64: 1>, scalar_prefetch = 0 : i64, scratch_operands = 0 : i64, tpu.core_type = #tpu.core_type<tc>, window_params = [{transform_indices = @transform_0, window_bounds = array<i64: 16, 128>}, {transform_indices = @transform_1, window_bounds = array<i64: 16, 128>}, {transform_indices = @transform_2, window_bounds = array<i64: 16, 32>}, {transform_indices = @transform_3, window_bounds = array<i64: 16, 32>}, {transform_indices = @transform_4, window_bounds = array<i64: 16, 1>}, {pipeline_mode = #tpu.pipeline_mode<synchronous>, transform_indices = @transform_5, window_bounds = array<i64: 128, 512>}, {pipeline_mode = #tpu.pipeline_mode<synchronous>, transform_indices = @transform_6, window_bounds = array<i64: 128, 512>}, {pipeline_mode = #tpu.pipeline_mode<synchronous>, transform_indices = @transform_7, window_bounds = array<i64: 1, 512>}, {pipeline_mode = #tpu.pipeline_mode<synchronous>, transform_indices = @transform_8, window_bounds = array<i64: 1, 512>}, {pipeline_mode = #tpu.pipeline_mode<synchronous>, transform_indices = @transform_9, window_bounds = array<i64: 512, 256>}, {pipeline_mode = #tpu.pipeline_mode<synchronous>, transform_indices = @transform_10, window_bounds = array<i64: 1, 256>}, {pipeline_mode = #tpu.pipeline_mode<synchronous>, transform_indices = @transform_11, window_bounds = array<i64: 256, 32>}, {pipeline_mode = #tpu.pipeline_mode<synchronous>, transform_indices = @transform_12, window_bounds = array<i64: 1, 32>}, {pipeline_mode = #tpu.pipeline_mode<synchronous>, transform_indices = @transform_13, window_bounds = array<i64: 32, 5>}, {pipeline_mode = #tpu.pipeline_mode<synchronous>, transform_indices = @transform_14, window_bounds = array<i64: 32, 5>}, {pipeline_mode = #tpu.pipeline_mode<synchronous>, transform_indices = @transform_15, window_bounds = array<i64: 1, 5>}, {transform_indices = @transform_16, window_bounds = array<i64: 16, 5>}]} {
    %c0 = arith.constant 0 : index
    %c0_0 = arith.constant 0 : index
    %0 = vector.load %arg5[%c0, %c0_0] : memref<16x1xf32, #tpu.memory_space<vmem>>, vector<16x1xf32>
    %c0_1 = arith.constant 0 : index
    %c0_2 = arith.constant 0 : index
    %1 = vector.load %arg1[%c0_1, %c0_2] : memref<16x128xbf16, #tpu.memory_space<vmem>>, vector<16x128xbf16>
    %c0_3 = arith.constant 0 : index
    %c0_4 = arith.constant 0 : index
    %2 = vector.load %arg6[%c0_3, %c0_4] : memref<128x512xbf16, #tpu.memory_space<vmem>>, vector<128x512xbf16>
    %cst = arith.constant dense<0.000000e+00> : vector<16x512xf32>
    %3 = tpu.matmul %1, %2, %cst {dimension_numbers = #tpu.dot_dimension_numbers<[1], [0], [0], [1], [0, 0, 1, 1], [], []>} : vector<16x128xbf16>, vector<128x512xbf16>, vector<16x512xf32> -> vector<16x512xf32>
    %c0_5 = arith.constant 0 : index
    %c0_6 = arith.constant 0 : index
    %4 = vector.load %arg2[%c0_5, %c0_6] : memref<16x128xbf16, #tpu.memory_space<vmem>>, vector<16x128xbf16>
    %c0_7 = arith.constant 0 : index
    %c0_8 = arith.constant 0 : index
    %5 = vector.load %arg7[%c0_7, %c0_8] : memref<128x512xbf16, #tpu.memory_space<vmem>>, vector<128x512xbf16>
    %cst_9 = arith.constant dense<0.000000e+00> : vector<16x512xf32>
    %6 = tpu.matmul %4, %5, %cst_9 {dimension_numbers = #tpu.dot_dimension_numbers<[1], [0], [0], [1], [0, 0, 1, 1], [], []>} : vector<16x128xbf16>, vector<128x512xbf16>, vector<16x512xf32> -> vector<16x512xf32>
    %7 = arith.addf %3, %6 : vector<16x512xf32>
    %c0_10 = arith.constant 0 : index
    %c0_11 = arith.constant 0 : index
    %8 = vector.load %arg8[%c0_10, %c0_11] : memref<1x512xf32, #tpu.memory_space<vmem>>, vector<1x512xf32>
    %9 = vector.broadcast %0 : vector<16x1xf32> to vector<16x512xf32>
    %10 = vector.broadcast %8 : vector<1x512xf32> to vector<16x512xf32>
    %11 = arith.mulf %9, %10 : vector<16x512xf32>
    %12 = arith.addf %7, %11 : vector<16x512xf32>
    %c0_12 = arith.constant 0 : index
    %c0_13 = arith.constant 0 : index
    %13 = vector.load %arg9[%c0_12, %c0_13] : memref<1x512xf32, #tpu.memory_space<vmem>>, vector<1x512xf32>
    %14 = vector.broadcast %13 : vector<1x512xf32> to vector<16x512xf32>
    %15 = arith.addf %12, %14 : vector<16x512xf32>
    %cst_14 = arith.constant 0.000000e+00 : f32
    %16 = vector.broadcast %cst_14 : f32 to vector<16x512xf32>
    %17 = arith.maximumf %15, %16 : vector<16x512xf32>
    %18 = arith.truncf %17 : vector<16x512xf32> to vector<16x512xbf16>
    %c0_15 = arith.constant 0 : index
    %c0_16 = arith.constant 0 : index
    %19 = vector.load %arg10[%c0_15, %c0_16] : memref<512x256xbf16, #tpu.memory_space<vmem>>, vector<512x256xbf16>
    %cst_17 = arith.constant dense<0.000000e+00> : vector<16x256xf32>
    %20 = tpu.matmul %18, %19, %cst_17 {dimension_numbers = #tpu.dot_dimension_numbers<[1], [0], [0], [1], [0, 0, 1, 1], [], []>} : vector<16x512xbf16>, vector<512x256xbf16>, vector<16x256xf32> -> vector<16x256xf32>
    %c0_18 = arith.constant 0 : index
    %c0_19 = arith.constant 0 : index
    %21 = vector.load %arg11[%c0_18, %c0_19] : memref<1x256xf32, #tpu.memory_space<vmem>>, vector<1x256xf32>
    %22 = vector.broadcast %21 : vector<1x256xf32> to vector<16x256xf32>
    %23 = arith.addf %20, %22 : vector<16x256xf32>
    %cst_20 = arith.constant 0.000000e+00 : f32
    %24 = vector.broadcast %cst_20 : f32 to vector<16x256xf32>
    %25 = arith.maximumf %23, %24 : vector<16x256xf32>
    %26 = arith.truncf %25 : vector<16x256xf32> to vector<16x256xbf16>
    %c0_21 = arith.constant 0 : index
    %c0_22 = arith.constant 0 : index
    %27 = vector.load %arg12[%c0_21, %c0_22] : memref<256x32xbf16, #tpu.memory_space<vmem>>, vector<256x32xbf16>
    %cst_23 = arith.constant dense<0.000000e+00> : vector<16x32xf32>
    %28 = tpu.matmul %26, %27, %cst_23 {dimension_numbers = #tpu.dot_dimension_numbers<[1], [0], [0], [1], [0, 0, 1, 1], [], []>} : vector<16x256xbf16>, vector<256x32xbf16>, vector<16x32xf32> -> vector<16x32xf32>
    %c0_24 = arith.constant 0 : index
    %c0_25 = arith.constant 0 : index
    %29 = vector.load %arg13[%c0_24, %c0_25] : memref<1x32xf32, #tpu.memory_space<vmem>>, vector<1x32xf32>
    %30 = vector.broadcast %29 : vector<1x32xf32> to vector<16x32xf32>
    %31 = arith.addf %28, %30 : vector<16x32xf32>
    %cst_26 = arith.constant 0.000000e+00 : f32
    %32 = vector.broadcast %cst_26 : f32 to vector<16x32xf32>
    %33 = arith.maximumf %31, %32 : vector<16x32xf32>
    %c0_27 = arith.constant 0 : index
    %c0_28 = arith.constant 0 : index
    %34 = vector.load %arg3[%c0_27, %c0_28] : memref<16x32xbf16, #tpu.memory_space<vmem>>, vector<16x32xbf16>
    %35 = arith.extf %34 : vector<16x32xbf16> to vector<16x32xf32>
    %c0_29 = arith.constant 0 : index
    %c0_30 = arith.constant 0 : index
    %36 = vector.load %arg4[%c0_29, %c0_30] : memref<16x32xbf16, #tpu.memory_space<vmem>>, vector<16x32xbf16>
    %37 = arith.extf %36 : vector<16x32xbf16> to vector<16x32xf32>
    %38 = arith.mulf %35, %37 : vector<16x32xf32>
    %39 = vector.broadcast %0 : vector<16x1xf32> to vector<16x32xf32>
    %40 = arith.mulf %38, %39 : vector<16x32xf32>
    %c0_31 = arith.constant 0 : index
    %c0_32 = arith.constant 0 : index
    %41 = vector.load %arg14[%c0_31, %c0_32] : memref<32x5xf32, #tpu.memory_space<vmem>>, vector<32x5xf32>
    %cst_33 = arith.constant dense<0.000000e+00> : vector<16x5xf32>
    %42 = tpu.matmul %40, %41, %cst_33 {dimension_numbers = #tpu.dot_dimension_numbers<[1], [0], [0], [1], [0, 0, 1, 1], [], []>} : vector<16x32xf32>, vector<32x5xf32>, vector<16x5xf32> -> vector<16x5xf32>
    %c0_34 = arith.constant 0 : index
    %c0_35 = arith.constant 0 : index
    %43 = vector.load %arg15[%c0_34, %c0_35] : memref<32x5xf32, #tpu.memory_space<vmem>>, vector<32x5xf32>
    %cst_36 = arith.constant dense<0.000000e+00> : vector<16x5xf32>
    %44 = tpu.matmul %33, %43, %cst_36 {dimension_numbers = #tpu.dot_dimension_numbers<[1], [0], [0], [1], [0, 0, 1, 1], [], []>} : vector<16x32xf32>, vector<32x5xf32>, vector<16x5xf32> -> vector<16x5xf32>
    %45 = arith.addf %42, %44 : vector<16x5xf32>
    %c0_37 = arith.constant 0 : index
    %c0_38 = arith.constant 0 : index
    %46 = vector.load %arg16[%c0_37, %c0_38] : memref<1x5xf32, #tpu.memory_space<vmem>>, vector<1x5xf32>
    %47 = vector.broadcast %46 : vector<1x5xf32> to vector<16x5xf32>
    %48 = arith.addf %45, %47 : vector<16x5xf32>
    %c0_39 = arith.constant 0 : index
    %c0_40 = arith.constant 0 : index
    %49 = vector.load %arg17[%c0_39, %c0_40] : memref<16x5xf32, #tpu.memory_space<vmem>>, vector<16x5xf32>
    tpu.vector_store %arg17[%c0_39, %c0_40], %48 {strides = array<i32>} : memref<16x5xf32, #tpu.memory_space<vmem>>, vector<16x5xf32>,
    return
  }
  func.func @transform_0(%arg0: i32) -> (i32, i32) {
    %c0_i32 = arith.constant 0 : i32
    %c0_i32_0 = arith.constant 0 : i32
    return %arg0, %c0_i32 : i32, i32
  }
  func.func @transform_1(%arg0: i32) -> (i32, i32) {
    %c0_i32 = arith.constant 0 : i32
    %c0_i32_0 = arith.constant 0 : i32
    return %arg0, %c0_i32 : i32, i32
  }
  func.func @transform_2(%arg0: i32) -> (i32, i32) {
    %c0_i32 = arith.constant 0 : i32
    %c0_i32_0 = arith.constant 0 : i32
    return %arg0, %c0_i32 : i32, i32
  }
  func.func @transform_3(%arg0: i32) -> (i32, i32) {
    %c0_i32 = arith.constant 0 : i32
    %c0_i32_0 = arith.constant 0 : i32
    return %arg0, %c0_i32 : i32, i32
  }
  func.func @transform_4(%arg0: i32) -> (i32, i32) {
    %c0_i32 = arith.constant 0 : i32
    %c0_i32_0 = arith.constant 0 : i32
    return %arg0, %c0_i32 : i32, i32
  }
  func.func @transform_5(%arg0: i32) -> (i32, i32) {
    %c0_i32 = arith.constant 0 : i32
    %c0_i32_0 = arith.constant 0 : i32
    %c0_i32_1 = arith.constant 0 : i32
    return %c0_i32, %c0_i32_0 : i32, i32
  }
  func.func @transform_6(%arg0: i32) -> (i32, i32) {
    %c0_i32 = arith.constant 0 : i32
    %c0_i32_0 = arith.constant 0 : i32
    %c0_i32_1 = arith.constant 0 : i32
    return %c0_i32, %c0_i32_0 : i32, i32
  }
  func.func @transform_7(%arg0: i32) -> (i32, i32) {
    %c0_i32 = arith.constant 0 : i32
    %c0_i32_0 = arith.constant 0 : i32
    %c0_i32_1 = arith.constant 0 : i32
    return %c0_i32, %c0_i32_0 : i32, i32
  }
  func.func @transform_8(%arg0: i32) -> (i32, i32) {
    %c0_i32 = arith.constant 0 : i32
    %c0_i32_0 = arith.constant 0 : i32
    %c0_i32_1 = arith.constant 0 : i32
    return %c0_i32, %c0_i32_0 : i32, i32
  }
  func.func @transform_9(%arg0: i32) -> (i32, i32) {
    %c0_i32 = arith.constant 0 : i32
    %c0_i32_0 = arith.constant 0 : i32
    %c0_i32_1 = arith.constant 0 : i32
    return %c0_i32, %c0_i32_0 : i32, i32
  }
  func.func @transform_10(%arg0: i32) -> (i32, i32) {
    %c0_i32 = arith.constant 0 : i32
    %c0_i32_0 = arith.constant 0 : i32
    %c0_i32_1 = arith.constant 0 : i32
    return %c0_i32, %c0_i32_0 : i32, i32
  }
  func.func @transform_11(%arg0: i32) -> (i32, i32) {
    %c0_i32 = arith.constant 0 : i32
    %c0_i32_0 = arith.constant 0 : i32
    %c0_i32_1 = arith.constant 0 : i32
    return %c0_i32, %c0_i32_0 : i32, i32
  }
  func.func @transform_12(%arg0: i32) -> (i32, i32) {
    %c0_i32 = arith.constant 0 : i32
    %c0_i32_0 = arith.constant 0 : i32
    %c0_i32_1 = arith.constant 0 : i32
    return %c0_i32, %c0_i32_0 : i32, i32
  }
  func.func @transform_13(%arg0: i32) -> (i32, i32) {
    %c0_i32 = arith.constant 0 : i32
    %c0_i32_0 = arith.constant 0 : i32
    %c0_i32_1 = arith.constant 0 : i32
    return %c0_i32, %c0_i32_0 : i32, i32
  }
  func.func @transform_14(%arg0: i32) -> (i32, i32) {
    %c0_i32 = arith.constant 0 : i32
    %c0_i32_0 = arith.constant 0 : i32
    %c0_i32_1 = arith.constant 0 : i32
    return %c0_i32, %c0_i32_0 : i32, i32
  }
  func.func @transform_15(%arg0: i32) -> (i32, i32) {
    %c0_i32 = arith.constant 0 : i32
    %c0_i32_0 = arith.constant 0 : i32
    %c0_i32_1 = arith.constant 0 : i32
    return %c0_i32, %c0_i32_0 : i32, i32
  }
  func.func @transform_16(%arg0: i32) -> (i32, i32) {
    %c0_i32 = arith.constant 0 : i32
    %c0_i32_0 = arith.constant 0 : i32
    return %arg0, %c0_i32 : i32, i32
  }
}

</mosaic_0001>

<bundles_post_ra>
// kernel: rt_pred_forward.1
= control target key start
LH: loop header
LB: loop body
LE: loop exit
PB: predicated region body
PF: predicated region fallthrough
CT: control target
= control target key end

     0   :  { %s2521_s0 = inlined_call_operand.vmem [shape: bf16[16,128], index: 0, kind: input, shape index: {}]   ;;  %s2522_s1 = inlined_call_operand.vmem [shape: bf16[16,128], index: 1, kind: input, shape index: {}]   ;;  %s2523_s2 = inlined_call_operand.vmem [shape: bf16[16,32], index: 2, kind: input, shape index: {}]   ;;  %s2524_s3 = inlined_call_operand.vmem [shape: bf16[16,32], index: 3, kind: input, shape index: {}]   ;;  %s2525_s4 = inlined_call_operand.vmem [shape: f32[16,1], index: 4, kind: input, shape index: {}]   ;;  %s2526_s5 = inlined_call_operand.vmem [shape: bf16[128,512], index: 5, kind: input, shape index: {}]   ;;  %s2527_s6 = inlined_call_operand.hbm [shape: bf16[128,512], index: 6, kind: input, shape index: {}]   ;;  %s2528_s7 = inlined_call_operand.vmem [shape: f32[1,512], index: 7, kind: input, shape index: {}]   ;;  %s2529_s8 = inlined_call_operand.vmem [shape: f32[1,512], index: 8, kind: input, shape index: {}]   ;;  %s2530_s9 = inlined_call_operand.hbm [shape: bf16[512,256], index: 9, kind: input, shape index: {}]   ;;  %s2531_s10 = inlined_call_operand.vmem [shape: f32[1,256], index: 10, kind: input, shape index: {}]   ;;  %s2532_s11 = inlined_call_operand.vmem [shape: bf16[256,32], index: 11, kind: input, shape index: {}]   ;;  %s2533_s12 = inlined_call_operand.vmem [shape: f32[1,32], index: 12, kind: input, shape index: {}]   ;;  %s2534_s13 = inlined_call_operand.vmem [shape: f32[32,5], index: 13, kind: input, shape index: {}]   ;;  %s2535_s14 = inlined_call_operand.vmem [shape: f32[32,5], index: 14, kind: input, shape index: {}]   ;;  %s2536_s15 = inlined_call_operand.vmem [shape: f32[1,5], index: 15, kind: input, shape index: {}]   ;;  %s2537_s16 = inlined_call_operand.vmem [shape: f32[16,5], index: 16, kind: output, shape index: {}]  }
   0x1   :  { %2538 = sst [smem:[#allocation8_spill]] %s2521_s0 }
   0x2   :  { %21 = vsyncpa [#allocation3], 0 }
   0x3   :  { %22 = vsyncpa [#allocation5], 0  ;;  %s2129_s21 = smov [#allocation2]   ;;  %s2081_s25 = scalar_lea.hbm %s2527_s6, 4096 }
   0x4   :  { %s40_s22 = sshll.u32 %s2129_s21, 4  ;;  %p2082_p0 = scmp.ne.s32.totalorder %s2527_s6, %s2081_s25  ;;  %s41_s22 = int_to_ptr.vmem [resolvable:$true] %s40_s22 }
   0x5   :  { %p2085_p1 = scmp.lt.u32.totalorder %s2081_s25, %s2527_s6 }
   0x7   :  { %p2087_p2 = pnand %p2085_p1, %p2082_p0 }
   0x9   :  { %2090 = shalt.err (!%p2087_p2)
}
   0xa   :  { %s2091_s30 = scalar_lea.vmem %s41_s22, 4096  ;;  %p2096_p4 = scmp.lt.s32.totalorder %s41_s22, %s41_s22 }
   0xb   :  { %p2092_p3 = scmp.ne.s32.totalorder %s41_s22, %s2091_s30  ;;  %p2097_p5 = scmp.lt.s32.totalorder %s2091_s30, %s2091_s30 }
   0xd   :  { %p2098_p6 = por %p2097_p5, %p2096_p4 }
   0xf   :  { %p2099_p7 = pnand %p2098_p6, %p2092_p3 }
  0x11   :  { %2102 = shalt.err (!%p2099_p7)
}
  0x12   :  { %s2130_s0 = smov 256   ;;  %s2131_s17 = smov 16  }
  0x13   :  { %46 = dma.hbm_to_vmem [thread:$0]  %s2527_s6, 4096, %s41_s22, [#allocation3], %s2130_s0, %s2130_s0, %s2131_s17  }
  0x14   :  { %s2132_s20 = smov [#allocation4]   ;;  %s2103_s25 = scalar_lea.hbm %s2530_s9, 8192 }
  0x15   :  { %s56_s21 = sshll.u32 %s2132_s20, 4  ;;  %p2104_p8 = scmp.ne.s32.totalorder %s2530_s9, %s2103_s25  ;;  %s57_s21 = int_to_ptr.vmem [resolvable:$true] %s56_s21 }
  0x16   :  { %p2107_p9 = scmp.lt.u32.totalorder %s2103_s25, %s2530_s9 }
  0x18   :  { %p2109_p10 = pnand %p2107_p9, %p2104_p8 }
  0x1a   :  { %2112 = shalt.err (!%p2109_p10)
}
  0x1b   :  { %s2113_s30 = scalar_lea.vmem %s57_s21, 8192  ;;  %p2118_p12 = scmp.lt.s32.totalorder %s57_s21, %s57_s21 }
  0x1c   :  { %p2114_p11 = scmp.ne.s32.totalorder %s57_s21, %s2113_s30  ;;  %p2119_p13 = scmp.lt.s32.totalorder %s2113_s30, %s2113_s30 }
  0x1e   :  { %p2120_p0 = por %p2119_p13, %p2118_p12 }
  0x20   :  { %p2121_p1 = pnand %p2120_p0, %p2114_p11 }
  0x22   :  { %2124 = shalt.err (!%p2121_p1)
}
  0x23   :  { %s2133_s6 = smov 128   ;;  %s2134_s22 = smov 8  }
  0x24   :  { %62 = dma.hbm_to_vmem [thread:$0]  %s2530_s9, 8192, %s57_s21, [#allocation5], %s2133_s6, %s2133_s6, %s2134_s22  }
  0x25   :  { %2125 = dma.done.wait [#allocation3], 4096  }
  0x26   :  { %2126 = vsyncadd [#allocation3], 4294963200 }
  0x27   :  { %2127 = dma.done.wait [#allocation5], 8192  }
  0x28   :  { %2128 = vsyncadd [#allocation5], 4294959104  ;;  %v2135_v0 = vmov 0   ;;  %v1871_v1 = vld [vmem:[#allocation2 + $0x4] ss:$16 sps:$4 sm:$0xff]   ;;  %s2539_s20 = sld [smem:[#allocation8_spill]] }
  0x29   :  { %350 = vmatprep.mubr.bf16.mxu1 %v2135_v0  ;;  %602 = vmatprep.mubr.bf16.mxu0 %v2135_v0  ;;  %v1873_v2 = vld [vmem:[%s2526_s5 + $0x4] ss:$16 sps:$4 sm:$0xff]   ;;  %v1875_v3 = vld [vmem:[#allocation2] ss:$16 sps:$4 sm:$0xff]   ;;  %v1922_v33 = vld [vmem:[#allocation2 + $0xc] ss:$16 sps:$4 sm:$0xff]  }
  0x2a   :  { %1870 = vset.pattern.permute.xlu0 %v2135_v0  ;;  %318 = vmatprep.subr.bf16.mxu1 %v1871_v1  ;;  %v1876_v4 = vld [vmem:[%s2526_s5] ss:$16 sps:$4 sm:$0xff]   ;;  %v1877_v5 = vld [vmem:[#allocation2 + $0x24] ss:$16 sps:$4 sm:$0xff]   ;;  %v1920_v36 = vld [vmem:[#allocation2 + $0x8] ss:$16 sps:$4 sm:$0xff]  }
  0x2b   :  { %570 = vmatprep.subr.bf16.mxu0 %v1873_v2  ;;  %319 = vmatpush1.bf16.msra.mxu1 %v1875_v3  ;;  %v1879_v6 = vld [vmem:[%s2526_s5 + $0x24] ss:$16 sps:$4 sm:$0xff]   ;;  %v1881_v7 = vld [vmem:[#allocation2 + $0x20] ss:$16 sps:$4 sm:$0xff]   ;;  %v1926_v37 = vld [vmem:[#allocation2 + $0x2c] ss:$16 sps:$4 sm:$0xff]  }
  0x2c   :  { %571 = vmatpush1.bf16.msra.mxu0 %v1876_v4  ;;  %320 = vmatprep.subr.bf16.mxu1 %v1877_v5  ;;  %v1882_v8 = vld [vmem:[%s2526_s5 + $0x20] ss:$16 sps:$4 sm:$0xff]   ;;  %v1883_v9 = vld [vmem:[#allocation2 + $0x44] ss:$16 sps:$4 sm:$0xff]   ;;  %v1924_v38 = vld [vmem:[#allocation2 + $0x28] ss:$16 sps:$4 sm:$0xff]  }
  0x2d   :  { %572 = vmatprep.subr.bf16.mxu0 %v1879_v6  ;;  %v1885_v10 = vld [vmem:[%s2526_s5 + $0x44] ss:$16 sps:$4 sm:$0xff]   ;;  %v1887_v11 = vld [vmem:[#allocation2 + $0x40] ss:$16 sps:$4 sm:$0xff]   ;;  %v1929_v39 = vld [vmem:[#allocation2 + $0x4c] ss:$16 sps:$4 sm:$0xff]  }
  0x2e   :  { %v1888_v12 = vld [vmem:[%s2526_s5 + $0x40] ss:$16 sps:$4 sm:$0xff]   ;;  %v1889_v13 = vld [vmem:[#allocation2 + $0x64] ss:$16 sps:$4 sm:$0xff]   ;;  %v1927_v40 = vld [vmem:[#allocation2 + $0x48] ss:$16 sps:$4 sm:$0xff]  }
  0x2f   :  { %321 = vmatpush1.bf16.msra.mxu1 %v1881_v7  ;;  %v1891_v14 = vld [vmem:[%s2526_s5 + $0x64] ss:$16 sps:$4 sm:$0xff]   ;;  %v1893_v15 = vld [vmem:[#allocation2 + $0x60] ss:$16 sps:$4 sm:$0xff]   ;;  %v1932_v41 = vld [vmem:[#allocation2 + $0x6c] ss:$16 sps:$4 sm:$0xff]  }
  0x30   :  { %573 = vmatpush1.bf16.msra.mxu0 %v1882_v8  ;;  %322 = vmatprep.subr.bf16.mxu1 %v1883_v9  ;;  %v1894_v16 = vld [vmem:[%s2526_s5 + $0x60] ss:$16 sps:$4 sm:$0xff]   ;;  %v1895_v17 = vld [vmem:[#allocation2 + $0x84] ss:$16 sps:$4 sm:$0xff]   ;;  %v1930_v42 = vld [vmem:[#allocation2 + $0x68] ss:$16 sps:$4 sm:$0xff]  }
  0x31   :  { %574 = vmatprep.subr.bf16.mxu0 %v1885_v10  ;;  %v1897_v18 = vld [vmem:[%s2526_s5 + $0x84] ss:$16 sps:$4 sm:$0xff]   ;;  %v1899_v19 = vld [vmem:[#allocation2 + $0x80] ss:$16 sps:$4 sm:$0xff]   ;;  %v1935_v43 = vld [vmem:[#allocation2 + $0x8c] ss:$16 sps:$4 sm:$0xff]  }
  0x32   :  { %v1900_v20 = vld [vmem:[%s2526_s5 + $0x80] ss:$16 sps:$4 sm:$0xff]   ;;  %v1901_v21 = vld [vmem:[#allocation2 + $0xa4] ss:$16 sps:$4 sm:$0xff]   ;;  %v83_v45 = vld [vmem:[%s2525_s4 + $0x8] sm:$0xff]  ;;  %vm1432_vm0 = vcmask 261120  }
  0x33   :  { %323 = vmatpush1.bf16.msra.mxu1 %v1887_v11  ;;  %v1903_v22 = vld [vmem:[%s2526_s5 + $0xa4] ss:$16 sps:$4 sm:$0xff]   ;;  %v1905_v23 = vld [vmem:[#allocation2 + $0xa0] ss:$16 sps:$4 sm:$0xff]   ;;  %v1933_v49 = vld [vmem:[#allocation2 + $0x88] ss:$16 sps:$4 sm:$0xff]  }
  0x34   :  { %575 = vmatpush1.bf16.msra.mxu0 %v1888_v12  ;;  %324 = vmatprep.subr.bf16.mxu1 %v1889_v13  ;;  %v1906_v24 = vld [vmem:[%s2526_s5 + $0xa0] ss:$16 sps:$4 sm:$0xff]   ;;  %v1907_v25 = vld [vmem:[#allocation2 + $0xc4] ss:$16 sps:$4 sm:$0xff]   ;;  %v1938_v50 = vld [vmem:[#allocation2 + $0xac] ss:$16 sps:$4 sm:$0xff]  }
  0x35   :  { %576 = vmatprep.subr.bf16.mxu0 %v1891_v14  ;;  %v1909_v26 = vld [vmem:[%s2526_s5 + $0xc4] ss:$16 sps:$4 sm:$0xff]   ;;  %v1911_v27 = vld [vmem:[#allocation2 + $0xc0] ss:$16 sps:$4 sm:$0xff]   ;;  %v1936_v53 = vld [vmem:[#allocation2 + $0xa8] ss:$16 sps:$4 sm:$0xff]  }
  0x36   :  { %v1912_v28 = vld [vmem:[%s2526_s5 + $0xc0] ss:$16 sps:$4 sm:$0xff]   ;;  %v1913_v29 = vld [vmem:[#allocation2 + $0xe4] ss:$16 sps:$4 sm:$0xff]   ;;  %v1941_v54 = vld [vmem:[#allocation2 + $0xcc] ss:$16 sps:$4 sm:$0xff]  }
  0x37   :  { %325 = vmatpush1.bf16.msra.mxu1 %v1893_v15  ;;  %v1915_v30 = vld [vmem:[%s2526_s5 + $0xe4] ss:$16 sps:$4 sm:$0xff]   ;;  %v1917_v31 = vld [vmem:[#allocation2 + $0xe0] ss:$16 sps:$4 sm:$0xff]   ;;  %v1939_v57 = vld [vmem:[#allocation2 + $0xc8] ss:$16 sps:$4 sm:$0xff]  }
  0x38   :  { %577 = vmatpush1.bf16.msra.mxu0 %v1894_v16  ;;  %326 = vmatprep.subr.bf16.mxu1 %v1895_v17  ;;  %v1918_v32 = vld [vmem:[%s2526_s5 + $0xe0] ss:$16 sps:$4 sm:$0xff]   ;;  %v1971_v47 = vld [vmem:[#allocation4 + $0x4] ss:$8 sps:$4 sm:$0xff]   ;;  %v1974_v48 = vld [vmem:[#allocation4 + $0x14] ss:$8 sps:$4 sm:$0xff]  }
  0x39   :  { %578 = vmatprep.subr.bf16.mxu0 %v1897_v18  ;;  %v2299_v34 = vld [vmem:[%s2522_s1] sm:$0xff]   ;;  %v1972_v51 = vld [vmem:[#allocation4 + $0x10] ss:$8 sps:$4 sm:$0xff]   ;;  %v1980_v56 = vld [vmem:[#allocation4 + $0x34] ss:$8 sps:$4 sm:$0xff]   ;;  %vm1604_vm1 = vcmask 39936  }
  0x3a   :  { %v2304_v35 = vld [vmem:[%s2539_s20] sm:$0xff]   ;;  %v1944_v58 = vld [vmem:[#allocation2 + $0xec] ss:$16 sps:$4 sm:$0xff]   ;;  %v1978_v59 = vld [vmem:[#allocation4 + $0x30] ss:$8 sps:$4 sm:$0xff]  }
  0x3b   :  { %327 = vmatpush1.bf16.msra.mxu1 %v1899_v19  ;;  %v82_v44 = vld [vmem:[%s2525_s4] sm:$0xff]  ;;  %v1942_v61 = vld [vmem:[#allocation2 + $0xe8] ss:$16 sps:$4 sm:$0xff]   ;;  %v1947_v62 = vld [vmem:[%s2526_s5 + $0xc] ss:$16 sps:$4 sm:$0xff]  }
  0x3c   :  { %579 = vmatpush1.bf16.msra.mxu0 %v1900_v20  ;;  %328 = vmatprep.subr.bf16.mxu1 %v1901_v21  ;;  %v1969_v46 = vld [vmem:[#allocation4] ss:$8 sps:$4 sm:$0xff]   ;;  %v1977_v52 = vld [vmem:[#allocation4 + $0x24] ss:$8 sps:$4 sm:$0xff]   ;;  %v1986_v3 = vld [vmem:[#allocation4 + $0x54] ss:$8 sps:$4 sm:$0xff]  }
  0x3d   :  { %580 = vmatprep.subr.bf16.mxu0 %v1903_v22  ;;  %659 = vperm.xlu0 %1870, %v82_v44   ;;  %v1975_v55 = vld [vmem:[#allocation4 + $0x20] ss:$8 sps:$4 sm:$0xff]   ;;  %v1983_v60 = vld [vmem:[#allocation4 + $0x44] ss:$8 sps:$4 sm:$0xff]   ;;  %v1984_v4 = vld [vmem:[#allocation4 + $0x50] ss:$8 sps:$4 sm:$0xff]  }
  0x3e   :  { %v1945_v63 = vld [vmem:[%s2526_s5 + $0x8] ss:$16 sps:$4 sm:$0xff]   ;;  %v1950_v2 = vld [vmem:[%s2526_s5 + $0x2c] ss:$16 sps:$4 sm:$0xff]  }
  0x3f   :  { %329 = vmatpush1.bf16.msra.mxu1 %v1905_v23  ;;  %v1981_v1 = vld [vmem:[#allocation4 + $0x40] ss:$8 sps:$4 sm:$0xff]   ;;  %v1989_v5 = vld [vmem:[#allocation4 + $0x64] ss:$8 sps:$4 sm:$0xff]   ;;  %v1992_v9 = vld [vmem:[#allocation4 + $0x74] ss:$8 sps:$4 sm:$0xff]  }
  0x40   :  { %581 = vmatpush1.bf16.msra.mxu0 %v1906_v24  ;;  %330 = vmatprep.subr.bf16.mxu1 %v1907_v25  ;;  %v1948_v6 = vld [vmem:[%s2526_s5 + $0x28] ss:$16 sps:$4 sm:$0xff]   ;;  %v1953_v7 = vld [vmem:[%s2526_s5 + $0x4c] ss:$16 sps:$4 sm:$0xff]  }
  0x41   :  { %582 = vmatprep.subr.bf16.mxu0 %v1909_v26  ;;  %664 = vperm.xlu0 %1870, %v83_v45   ;;  %v1987_v8 = vld [vmem:[#allocation4 + $0x60] ss:$8 sps:$4 sm:$0xff]   ;;  %v1956_v11 = vld [vmem:[%s2526_s5 + $0x6c] ss:$16 sps:$4 sm:$0xff]   ;;  %v1990_v12 = vld [vmem:[#allocation4 + $0x70] ss:$8 sps:$4 sm:$0xff]  }
  0x42   :  { %v1951_v10 = vld [vmem:[%s2526_s5 + $0x48] ss:$16 sps:$4 sm:$0xff]   ;;  %v1995_v13 = vld [vmem:[#allocation4 + $0x84] ss:$8 sps:$4 sm:$0xff]   ;;  %v1998_v16 = vld [vmem:[#allocation4 + $0x94] ss:$8 sps:$4 sm:$0xff]  }
  0x43   :  { %331 = vmatpush1.bf16.msra.mxu1 %v1911_v27  ;;  %v1959_v14 = vld [vmem:[%s2526_s5 + $0x8c] ss:$16 sps:$4 sm:$0xff]   ;;  %v1993_v15 = vld [vmem:[#allocation4 + $0x80] ss:$8 sps:$4 sm:$0xff]   ;;  %v1996_v19 = vld [vmem:[#allocation4 + $0x90] ss:$8 sps:$4 sm:$0xff]  }
  0x44   :  { %583 = vmatpush1.bf16.msra.mxu0 %v1912_v28  ;;  %332 = vmatprep.subr.bf16.mxu1 %v1913_v29  ;;  %v1957_v17 = vld [vmem:[%s2526_s5 + $0x88] ss:$16 sps:$4 sm:$0xff]   ;;  %v1962_v18 = vld [vmem:[%s2526_s5 + $0xac] ss:$16 sps:$4 sm:$0xff]  }
  0x45   :  { %584 = vmatprep.subr.bf16.mxu0 %v1915_v30  ;;  %v2001_v20 = vld [vmem:[#allocation4 + $0xa4] ss:$8 sps:$4 sm:$0xff]   ;;  %v1960_v21 = vld [vmem:[%s2526_s5 + $0xa8] ss:$16 sps:$4 sm:$0xff]   ;;  %v2004_v24 = vld [vmem:[#allocation4 + $0xb4] ss:$8 sps:$4 sm:$0xff]  }
  0x46   :  { %v1965_v22 = vld [vmem:[%s2526_s5 + $0xcc] ss:$16 sps:$4 sm:$0xff]   ;;  %v1999_v23 = vld [vmem:[#allocation4 + $0xa0] ss:$8 sps:$4 sm:$0xff]   ;;  %v2002_v27 = vld [vmem:[#allocation4 + $0xb0] ss:$8 sps:$4 sm:$0xff]  }
  0x47   :  { %333 = vmatpush1.bf16.msra.mxu1 %v1917_v31  ;;  %v1963_v25 = vld [vmem:[%s2526_s5 + $0xc8] ss:$16 sps:$4 sm:$0xff]   ;;  %v1968_v26 = vld [vmem:[%s2526_s5 + $0xec] ss:$16 sps:$4 sm:$0xff]   ;;  %v668_v31 = vlaneseq }
  0x48   :  { %585 = vmatpush1.bf16.msra.mxu0 %v1918_v32  ;;  %361 = vmatprep.subr.bf16.mxu1 %v1922_v33  ;;  %v2007_v28 = vld [vmem:[#allocation4 + $0xc4] ss:$8 sps:$4 sm:$0xff]   ;;  %v1966_v29 = vld [vmem:[%s2526_s5 + $0xe8] ss:$16 sps:$4 sm:$0xff]   ;;  %v2371_v33 = vld [vmem:[%s2528_s7] sm:$0xf] }
  0x49   :  { %1142 = vmatprep.subr.bf16.mxu0 %v1971_v47  ;;  %v2005_v30 = vld [vmem:[#allocation4 + $0xc0] ss:$8 sps:$4 sm:$0xff]   ;;  %v2366_v32 = vshrl.u32 %v668_v31, 7 }
  0x4a   :  { %351 = vmatmul.mubr.bf16.vlgmr.msra.gmra.mrb[0].mxu1 %v2299_v34  ;;  %v2388_v47 = vld [vmem:[%s2529_s8] sm:$0xf] }
  0x4b   :  { %603 = vmatmul.mubr.bf16.vlgmr.msra.gmra.mrb[0].mxu0 %v2304_v35  ;;  %362 = vmatpush1.bf16.msra.mxu1 %v1920_v36 }
  0x4c   :  { %393 = vmatprep.mubr.bf16.mxu1 %v2135_v0  ;;  %363 = vmatprep.subr.bf16.mxu1 %v1926_v37  ;;  %v2010_v37 = vld [vmem:[#allocation4 + $0xd4] ss:$8 sps:$4 sm:$0xff]  }
  0x4d   :  { %1143 = vmatpush1.bf16.msra.mxu0 %v1969_v46 }
  0x4e   :  { %1144 = vmatprep.subr.bf16.mxu0 %v1974_v48 }
  0x4f   :  { %364 = vmatpush1.bf16.msra.mxu1 %v1924_v38  ;;  %v2008_v38 = vld [vmem:[#allocation4 + $0xd0] ss:$8 sps:$4 sm:$0xff]  }
  0x50   :  { %365 = vmatprep.subr.bf16.mxu1 %v1929_v39  ;;  %v2013_v39 = vld [vmem:[#allocation4 + $0xe4] ss:$8 sps:$4 sm:$0xff]  }
  0x51   :  { %1145 = vmatpush1.bf16.msra.mxu0 %v1972_v51  ;;  %v2067_v51 = vld [vmem:[%s2532_s11 + $0x48] sm:$0xff]  }
  0x52   :  { %1146 = vmatprep.subr.bf16.mxu0 %v1977_v52  ;;  %v2068_v52 = vld [vmem:[%s2532_s11 + $0x8] sm:$0xff]  }
  0x53   :  { %366 = vmatpush1.bf16.msra.mxu1 %v1927_v40  ;;  %v2011_v40 = vld [vmem:[#allocation4 + $0xe0] ss:$8 sps:$4 sm:$0xff]  }
  0x54   :  { %367 = vmatprep.subr.bf16.mxu1 %v1932_v41  ;;  %v2014_v41 = vld [vmem:[#allocation4 + $0xf0] ss:$8 sps:$4 sm:$0xff]  }
  0x55   :  { %1147 = vmatpush1.bf16.msra.mxu0 %v1975_v55  ;;  %v2071_v55 = vld [vmem:[%s2532_s11 + $0x58] sm:$0xff]  }
  0x56   :  { %1148 = vmatprep.subr.bf16.mxu0 %v1980_v56  ;;  %v2072_v56 = vld [vmem:[%s2532_s11 + $0x18] sm:$0xff]  }
  0x57   :  { %368 = vmatpush1.bf16.msra.mxu1 %v1930_v42  ;;  %v2019_v42 = vld [vmem:[#allocation4 + $0x104] ss:$8 sps:$4 sm:$0xff]  }
  0x58   :  { %369 = vmatprep.subr.bf16.mxu1 %v1935_v43 }
  0x59   :  { %1149 = vmatpush1.bf16.msra.mxu0 %v1978_v59  ;;  %v2075_v59 = vld [vmem:[%s2532_s11 + $0x68] sm:$0xff]  }
  0x5a   :  { %1150 = vmatprep.subr.bf16.mxu0 %v1983_v60  ;;  %v2427_v60 = vsub.s32 0, %v2366_v32 }
  0x5b   :  { %370 = vmatpush1.bf16.msra.mxu1 %v1933_v49  ;;  %v2065_v49 = vld [vmem:[%s2532_s11 + $0x40] sm:$0xff]  }
  0x5c   :  { %371 = vmatprep.subr.bf16.mxu1 %v1938_v50  ;;  %v2066_v50 = vld [vmem:[%s2532_s11] sm:$0xff]  }
  0x5d   :  { %1151 = vmatpush1.bf16.msra.mxu0 %v1981_v1 }
  0x5e   :  { %1152 = vmatprep.subr.bf16.mxu0 %v1986_v3 }
  0x5f   :  { %372 = vmatpush1.bf16.msra.mxu1 %v1936_v53  ;;  %v2069_v53 = vld [vmem:[%s2532_s11 + $0x50] sm:$0xff]  }
  0x60   :  { %373 = vmatprep.subr.bf16.mxu1 %v1941_v54  ;;  %v2070_v54 = vld [vmem:[%s2532_s11 + $0x10] sm:$0xff]  }
  0x61   :  { %1153 = vmatpush1.bf16.msra.mxu0 %v1984_v4 }
  0x62   :  { %1154 = vmatprep.subr.bf16.mxu0 %v1989_v5  ;;  %v709_v5 = vrot.slane %v2388_v47, %v2427_v60 }
  0x63   :  { %374 = vmatpush1.bf16.msra.mxu1 %v1939_v57  ;;  %v2073_v57 = vld [vmem:[%s2532_s11 + $0x60] sm:$0xff]  }
  0x64   :  { %375 = vmatprep.subr.bf16.mxu1 %v1944_v58  ;;  %v2074_v58 = vld [vmem:[%s2532_s11 + $0x20] sm:$0xff]  }
  0x65   :  { %1155 = vmatpush1.bf16.msra.mxu0 %v1987_v8 }
  0x66   :  { %1156 = vmatprep.subr.bf16.mxu0 %v1992_v9 }
  0x67   :  { %376 = vmatpush1.bf16.msra.mxu1 %v1942_v61  ;;  %v2430_v61 = vsub.s32 1, %v2366_v32 }
  0x68   :  { %613 = vmatprep.subr.bf16.mxu1 %v1947_v62  ;;  %v671_v62 = vrot.slane %v2371_v33, %v2427_v60 }
  0x69   :  { %1157 = vmatpush1.bf16.msra.mxu0 %v1990_v12 }
  0x6a   :  { %394 = vmatmul.mubr.bf16.vlgmr.msra.gmra.mrb[4].mxu1 %v2299_v34  ;;  %1158 = vmatprep.subr.bf16.mxu0 %v1995_v13  ;;  %v678_v34 = vsub.s32 2, %v2366_v32 }
  0x6b   :  { %614 = vmatpush1.bf16.msra.mxu1 %v1945_v63  ;;  %645 = vmatprep.mubr.bf16.mxu1 %v2135_v0  ;;  %v1954_v0 = vld [vmem:[%s2526_s5 + $0x68] ss:$16 sps:$4 sm:$0xff]   ;;  %v675_v63 = vrot.slane %v2371_v33, %v2430_v61 }
  0x6c   :  { %615 = vmatprep.subr.bf16.mxu1 %v1950_v2  ;;  %v679_v36 = vrot.slane %v2371_v33, %v678_v34  ;;  %v2391_v48 = vrot.slane %v2388_v47, %v678_v34  ;;  %v2017_v34 = vld [vmem:[#allocation4 + $0x100] ss:$8 sps:$4 sm:$0xff]  }
  0x6d   :  { %1159 = vmatpush1.bf16.msra.mxu0 %v1993_v15 }
  0x6e   :  { %1160 = vmatprep.subr.bf16.mxu0 %v1998_v16 }
  0x6f   :  { %616 = vmatpush1.bf16.msra.mxu1 %v1948_v6 }
  0x70   :  { %617 = vmatprep.subr.bf16.mxu1 %v1953_v7 }
  0x71   :  { %1161 = vmatpush1.bf16.msra.mxu0 %v1996_v19 }
  0x72   :  { %1162 = vmatprep.subr.bf16.mxu0 %v2001_v20 }
  0x73   :  { %618 = vmatpush1.bf16.msra.mxu1 %v1951_v10  ;;  %v713_v10 = vrot.slane %v2388_v47, %v2430_v61 }
  0x74   :  { %619 = vmatprep.subr.bf16.mxu1 %v1956_v11 }
  0x75   :  { %1163 = vmatpush1.bf16.msra.mxu0 %v1999_v23 }
  0x76   :  { %1164 = vmatprep.subr.bf16.mxu0 %v2004_v24 }
  0x77   :  { %620 = vmatpush1.bf16.msra.mxu1 %v1954_v0 }
  0x78   :  { %621 = vmatprep.subr.bf16.mxu1 %v1959_v14 }
  0x79   :  { %1165 = vmatpush1.bf16.msra.mxu0 %v2002_v27 }
  0x7a   :  { %1166 = vmatprep.subr.bf16.mxu0 %v2007_v28 }
  0x7b   :  { %622 = vmatpush1.bf16.msra.mxu1 %v1957_v17 }
  0x7c   :  { %623 = vmatprep.subr.bf16.mxu1 %v1962_v18 }
  0x7d   :  { %1167 = vmatpush1.bf16.msra.mxu0 %v2005_v30 }
  0x7e   :  { %1168 = vmatprep.subr.bf16.mxu0 %v2010_v37  ;;  %v2020_v37 = vld [vmem:[#allocation4 + $0x110] ss:$8 sps:$4 sm:$0xff]  }
  0x7f   :  { %624 = vmatpush1.bf16.msra.mxu1 %v1960_v21 }
  0x80   :  { %625 = vmatprep.subr.bf16.mxu1 %v1965_v22 }
  0x81   :  { %1169 = vmatpush1.bf16.msra.mxu0 %v2008_v38  ;;  %v2025_v38 = vld [vmem:[#allocation4 + $0x124] ss:$8 sps:$4 sm:$0xff]  }
  0x82   :  { %1170 = vmatprep.subr.bf16.mxu0 %v2013_v39  ;;  %v2023_v39 = vld [vmem:[#allocation4 + $0x120] ss:$8 sps:$4 sm:$0xff]  }
  0x83   :  { %626 = vmatpush1.bf16.msra.mxu1 %v1963_v25 }
  0x84   :  { %627 = vmatprep.subr.bf16.mxu1 %v1968_v26 }
  0x85   :  { %1171 = vmatpush1.bf16.msra.mxu0 %v2011_v40  ;;  %v2028_v40 = vld [vmem:[#allocation4 + $0x134] ss:$8 sps:$4 sm:$0xff]  }
  0x87   :  { %628 = vmatpush1.bf16.msra.mxu1 %v1966_v29 }
  0x88   :  { %1773 = vmatprep.subr.bf16.mxu1 %v2065_v49  ;;  %v2034_v49 = vld [vmem:[#allocation4 + $0x154] ss:$8 sps:$4 sm:$0xff]  }
  0x8a   :  { %646 = vmatmul.mubr.bf16.vlgmr.msra.gmra.mrb[4].mxu1 %v2304_v35  ;;  %v2016_v35 = vld [vmem:[#allocation4 + $0xf4] ss:$8 sps:$4 sm:$0xff]  }
  0x8b   :  { %1172 = vmatprep.subr.bf16.mxu0 %v2016_v35  ;;  %1774 = vmatpush3.bf16.msra.mxu1 %v2066_v50  ;;  %v2026_v35 = vld [vmem:[#allocation4 + $0x130] ss:$8 sps:$4 sm:$0xff]  }
  0x8c   :  { %1173 = vmatpush1.bf16.msra.mxu0 %v2014_v41  ;;  %1775 = vmatprep.subr.bf16.mxu1 %v2067_v51  ;;  %v2031_v41 = vld [vmem:[#allocation4 + $0x144] ss:$8 sps:$4 sm:$0xff]   ;;  %v2032_v50 = vld [vmem:[#allocation4 + $0x150] ss:$8 sps:$4 sm:$0xff]  }
  0x8d   :  { %1185 = vmatprep.subr.bf16.mxu0 %v2019_v42  ;;  %v2029_v42 = vld [vmem:[#allocation4 + $0x140] ss:$8 sps:$4 sm:$0xff]   ;;  %v2037_v51 = vld [vmem:[#allocation4 + $0x164] ss:$8 sps:$4 sm:$0xff]  }
  0x8f   :  { %1776 = vmatpush3.bf16.msra.mxu1 %v2068_v52  ;;  %v2035_v52 = vld [vmem:[#allocation4 + $0x160] ss:$8 sps:$4 sm:$0xff]  }
  0x90   :  { %1777 = vmatprep.subr.bf16.mxu1 %v2069_v53  ;;  %v2040_v53 = vld [vmem:[#allocation4 + $0x174] ss:$8 sps:$4 sm:$0xff]  }
  0x93   :  { %1778 = vmatpush3.bf16.msra.mxu1 %v2070_v54  ;;  %v2038_v54 = vld [vmem:[#allocation4 + $0x170] ss:$8 sps:$4 sm:$0xff]  }
  0x94   :  { %1779 = vmatprep.subr.bf16.mxu1 %v2071_v55  ;;  %v2043_v55 = vld [vmem:[#allocation4 + $0x184] ss:$8 sps:$4 sm:$0xff]  }
  0x97   :  { %1780 = vmatpush3.bf16.msra.mxu1 %v2072_v56  ;;  %v2041_v56 = vld [vmem:[#allocation4 + $0x180] ss:$8 sps:$4 sm:$0xff]  }
  0x98   :  { %1781 = vmatprep.subr.bf16.mxu1 %v2073_v57  ;;  %v2046_v57 = vld [vmem:[#allocation4 + $0x194] ss:$8 sps:$4 sm:$0xff]  }
  0x9b   :  { %1782 = vmatpush3.bf16.msra.mxu1 %v2074_v58  ;;  %v2044_v58 = vld [vmem:[#allocation4 + $0x190] ss:$8 sps:$4 sm:$0xff]  }
  0x9c   :  { %1783 = vmatprep.subr.bf16.mxu1 %v2075_v59  ;;  %v2049_v59 = vld [vmem:[#allocation4 + $0x1a4] ss:$8 sps:$4 sm:$0xff]  }
  0xbc   :  { %v2375_v43 = vpop.permute.xlu0 %659 }
  0xbd   :  { %v2378_v44 = vmul.f32 %v679_v36, %v2375_v43  ;;  %v688_v1 = vmul.f32 %v671_v62, %v2375_v43  ;;  %v689_v9 = vmul.f32 %v675_v63, %v2375_v43 }
  0xc0   :  { %v2380_v45 = vpop.permute.xlu0 %664 }
  0xc1   :  { %v2383_v46 = vmul.f32 %v679_v36, %v2380_v45  ;;  %v692_v14 = vmul.f32 %v671_v62, %v2380_v45  ;;  %v693_v19 = vmul.f32 %v675_v63, %v2380_v45  ;;  %v2022_v36 = vld [vmem:[#allocation4 + $0x114] ss:$8 sps:$4 sm:$0xff]   ;;  %v2047_v62 = vld [vmem:[#allocation4 + $0x1a0] ss:$8 sps:$4 sm:$0xff]  }
  0xc2   :  { %v2052_v63 = vld [vmem:[#allocation4 + $0x1b4] ss:$8 sps:$4 sm:$0xff]  }
 0x11d   :  { %v352_v2 = vpop.f32.mrb[0].mxu1 }
 0x11e   :  { %v604_v3 = vpop.f32.mrb[0].mxu0  ;;  %v354_v6 = vpop.f32.mrb[1].mxu1 }
 0x11f   :  { %v605_v4 = vadd.f32 %v604_v3, %v352_v2  ;;  %v606_v7 = vpop.f32.mrb[1].mxu0  ;;  %v356_v11 = vpop.f32.mrb[2].mxu1  ;;  %v682_v2 = vsub.s32 3, %v2366_v32  ;;  %v2055_v3 = vld [vmem:[#allocation4 + $0x1c4] ss:$8 sps:$4 sm:$0xff]  }
 0x120   :  { %v607_v8 = vadd.f32 %v606_v7, %v354_v6  ;;  %v608_v12 = vpop.f32.mrb[2].mxu0  ;;  %v358_v15 = vpop.f32.mrb[3].mxu1  ;;  %v2058_v6 = vld [vmem:[#allocation4 + $0x1d4] ss:$8 sps:$4 sm:$0xff]   ;;  %v2061_v32 = vld [vmem:[#allocation4 + $0x1e4] ss:$8 sps:$4 sm:$0xff]  }
 0x121   :  { %v696_v13 = vadd.f32 %v688_v1, %v605_v4  ;;  %v609_v0 = vadd.f32 %v608_v12, %v356_v11  ;;  %v610_v16 = vpop.f32.mrb[3].mxu0  ;;  %v2050_v1 = vld [vmem:[#allocation4 + $0x1b0] ss:$8 sps:$4 sm:$0xff]   ;;  %v2053_v4 = vld [vmem:[#allocation4 + $0x1c0] ss:$8 sps:$4 sm:$0xff]  }
 0x122   :  { %v697_v17 = vadd.f32 %v689_v9, %v607_v8  ;;  %v611_v18 = vadd.f32 %v610_v16, %v358_v15  ;;  %v721_v9 = vrot.slane %v2388_v47, %v682_v2 }
 0x123   :  { %v726_v20 = vadd.f32 %v709_v5, %v696_v13  ;;  %v700_v21 = vadd.f32 %v692_v14, %v609_v0 }
 0x124   :  { %v727_v22 = vadd.f32 %v713_v10, %v697_v17  ;;  %v701_v23 = vadd.f32 %v693_v19, %v611_v18  ;;  %v2059_v19 = vld [vmem:[#allocation4 + $0x1e0] ss:$8 sps:$4 sm:$0xff]  }
 0x125   :  { %v730_v24 = vadd.f32 %v709_v5, %v700_v21  ;;  %v734_v26 = vmax.f32 %v726_v20, 0.0  ;;  %v683_v5 = vrot.slane %v2371_v33, %v682_v2  ;;  %v1766_v2 = vld [vmem:[%s2523_s2] sm:$0xff]  }
 0x126   :  { %v731_v25 = vadd.f32 %v713_v10, %v701_v23  ;;  %v735_v28 = vmax.f32 %v727_v22, 0.0  ;;  %v2056_v10 = vld [vmem:[#allocation4 + $0x1d0] ss:$8 sps:$4 sm:$0xff]  }
 0x127   :  { %v738_v27 = vmax.f32 %v730_v24, 0.0  ;;  %v691_v8 = vmul.f32 %v683_v5, %v2375_v43  ;;  %v695_v14 = vmul.f32 %v683_v5, %v2380_v45  ;;  %v1743_v5 = vld [vmem:[%s2533_s12] ss:$0 sm:$0xff] }
 0x128   :  { %v739_v29 = vmax.f32 %v731_v25, 0.0  ;;  %v2062_v25 = vld [vmem:[#allocation4 + $0x1f0] ss:$8 sps:$4 sm:$0xff]  }
 0x129   :  { %v742_v30 = vpack.c.bf16 %v738_v27, %v734_v26 }
 0x12a   :  { %v743_v31 = vpack.c.bf16 %v739_v29, %v735_v28  ;;  %v2078_v28 = vld [vmem:[%s2532_s11 + $0x30] sm:$0xff]   ;;  %v2079_v29 = vld [vmem:[%s2532_s11 + $0x78] sm:$0xff]  }
 0x12c   :  { %1174 = vmatprep.mubr.bf16.mxu0 %v743_v31  ;;  %v810_v31 = vld [vmem:[%s2531_s10] sm:$0x3] }
 0x12d   :  { %1175 = vmatmul.mubr.bf16.vlgmr.msra.gmra.mrb[4].mxu0 %v742_v30  ;;  %v2080_v30 = vld [vmem:[%s2532_s11 + $0x38] sm:$0xff]  }
 0x12e   :  { %1186 = vmatpush1.bf16.msra.mxu0 %v2017_v34  ;;  %v815_v34 = vrot.slane %v810_v31, %v2427_v60  ;;  %v1428_v60 = vld [vmem:[%s2535_s14] sm:$0xff] }
 0x12f   :  { %1187 = vmatprep.subr.bf16.mxu0 %v2022_v36  ;;  %v819_v36 = vrot.slane %v810_v31, %v2430_v61  ;;  %v1429_v61 = vld [vmem:[%s2535_s14 + $0x8] sm:$0xff] }
 0x132   :  { %1188 = vmatpush1.bf16.msra.mxu0 %v2020_v37 }
 0x133   :  { %1189 = vmatprep.subr.bf16.mxu0 %v2025_v38 }
 0x136   :  { %1190 = vmatpush1.bf16.msra.mxu0 %v2023_v39 }
 0x137   :  { %1191 = vmatprep.subr.bf16.mxu0 %v2028_v40 }
 0x13a   :  { %1192 = vmatpush1.bf16.msra.mxu0 %v2026_v35 }
 0x13b   :  { %1193 = vmatprep.subr.bf16.mxu0 %v2031_v41 }
 0x13e   :  { %1194 = vmatpush1.bf16.msra.mxu0 %v2029_v42 }
 0x13f   :  { %1195 = vmatprep.subr.bf16.mxu0 %v2034_v49 }
 0x142   :  { %1196 = vmatpush1.bf16.msra.mxu0 %v2032_v50 }
 0x143   :  { %1197 = vmatprep.subr.bf16.mxu0 %v2037_v51 }
 0x146   :  { %1198 = vmatpush1.bf16.msra.mxu0 %v2035_v52 }
 0x147   :  { %1199 = vmatprep.subr.bf16.mxu0 %v2040_v53 }
 0x14a   :  { %1200 = vmatpush1.bf16.msra.mxu0 %v2038_v54 }
 0x14b   :  { %1201 = vmatprep.subr.bf16.mxu0 %v2043_v55 }
 0x14e   :  { %1202 = vmatpush1.bf16.msra.mxu0 %v2041_v56  ;;  %v1829_v56 = vpack.c.bf16 %v1429_v61, %v1428_v60 }
 0x14f   :  { %1203 = vmatprep.subr.bf16.mxu0 %v2046_v57  ;;  %v1430_v57 = vld [vmem:[%s2535_s14 + $0x10] sm:$0xff] }
 0x152   :  { %1204 = vmatpush1.bf16.msra.mxu0 %v2044_v58  ;;  %v1431_v58 = vld [vmem:[%s2535_s14 + $0x18] sm:$0xff] }
 0x153   :  { %1205 = vmatprep.subr.bf16.mxu0 %v2049_v59  ;;  %v1833_v59 = vpack.c.bf16 %v1431_v58, %v1430_v57 }
 0x156   :  { %1206 = vmatpush1.bf16.msra.mxu0 %v2047_v62  ;;  %v1424_v62 = vld [vmem:[%s2534_s13] sm:$0xff] }
 0x157   :  { %1207 = vmatprep.subr.bf16.mxu0 %v2052_v63  ;;  %v1425_v63 = vld [vmem:[%s2534_s13 + $0x8] sm:$0xff] }
 0x15a   :  { %1208 = vmatpush1.bf16.msra.mxu0 %v2050_v1  ;;  %v1837_v1 = vpack.c.bf16 %v1425_v63, %v1424_v62 }
 0x15b   :  { %1209 = vmatprep.subr.bf16.mxu0 %v2055_v3  ;;  %v1770_v3 = vld [vmem:[%s2524_s3] sm:$0xff]  }
 0x15d   :  { %v647_v7 = vpop.f32.mrb[4].mxu1 }
 0x15e   :  { %1210 = vmatpush1.bf16.msra.mxu0 %v2053_v4  ;;  %v698_v11 = vadd.f32 %v2378_v44, %v647_v7  ;;  %v649_v12 = vpop.f32.mrb[5].mxu1  ;;  %v2064_v44 = vld [vmem:[#allocation4 + $0x1f4] ss:$8 sps:$4 sm:$0xff]   ;;  %v1767_v7 = vunpack.c.l.bf16 %v1766_v2 }
 0x15f   :  { %1211 = vmatprep.subr.bf16.mxu0 %v2058_v6  ;;  %v699_v13 = vadd.f32 %v691_v8, %v649_v12  ;;  %v651_v0 = vpop.f32.mrb[6].mxu1  ;;  %v1771_v8 = vunpack.c.l.bf16 %v1770_v3 }
 0x160   :  { %v728_v33 = vadd.f32 %v2391_v48, %v698_v11  ;;  %v702_v15 = vadd.f32 %v2383_v46, %v651_v0  ;;  %v653_v16 = vpop.f32.mrb[7].mxu1  ;;  %v2076_v46 = vld [vmem:[%s2532_s11 + $0x28] sm:$0xff]   ;;  %v1426_v0 = vld [vmem:[%s2534_s13 + $0x10] sm:$0xff] }
 0x161   :  { %v729_v17 = vadd.f32 %v721_v9, %v699_v13  ;;  %v703_v18 = vadd.f32 %v695_v14, %v653_v16  ;;  %1784 = vmatpush3.bf16.msra.mxu1 %v2076_v46  ;;  %v1420_v13 = vmul.f32 %v1771_v8, %v1767_v7  ;;  %v1427_v14 = vld [vmem:[%s2534_s13 + $0x18] sm:$0xff]  ;;  %v1768_v16 = vunpack.c.h.bf16 %v1766_v2 }
 0x162   :  { %1212 = vmatpush1.bf16.msra.mxu0 %v2056_v10  ;;  %v732_v47 = vadd.f32 %v2391_v48, %v702_v15  ;;  %v736_v21 = vmax.f32 %v728_v33, 0.0  ;;  %v2077_v48 = vld [vmem:[%s2532_s11 + $0x70] sm:$0xff]  }
 0x163   :  { %1213 = vmatprep.subr.bf16.mxu0 %v2061_v32  ;;  %v733_v20 = vadd.f32 %v721_v9, %v703_v18  ;;  %v737_v23 = vmax.f32 %v729_v17, 0.0  ;;  %1785 = vmatprep.subr.bf16.mxu1 %v2077_v48  ;;  %v1772_v17 = vunpack.c.h.bf16 %v1770_v3 }
 0x164   :  { %v740_v22 = vmax.f32 %v732_v47, 0.0  ;;  %v1422_v47 = vmul.f32 %v1420_v13, %v2375_v43 }
 0x165   :  { %v741_v24 = vmax.f32 %v733_v20, 0.0  ;;  %1786 = vmatpush3.bf16.msra.mxu1 %v2078_v28 }
 0x166   :  { %1214 = vmatpush1.bf16.msra.mxu0 %v2059_v19  ;;  %v744_v26 = vpack.c.bf16 %v740_v22, %v736_v21  ;;  %1787 = vmatprep.subr.bf16.mxu1 %v2079_v29  ;;  %v1841_v19 = vpack.c.bf16 %v1427_v14, %v1426_v0  ;;  %v1764_v21 = vld [vmem:[%s2536_s15] ss:$0 sm:$0xff] }
 0x167   :  { %1215 = vmatprep.subr.bf16.mxu0 %v2064_v44  ;;  %v745_v27 = vpack.c.bf16 %v741_v24, %v737_v23  ;;  %v1421_v44 = vmul.f32 %v1772_v17, %v1768_v16 }
 0x169   :  { %1217 = vmatprep.mubr.bf16.mxu0 %v745_v27  ;;  %1788 = vmatpush3.bf16.msra.mxu1 %v2080_v30  ;;  %v1423_v20 = vmul.f32 %v1421_v44, %v2380_v45 }
 0x16a   :  { %1216 = vmatpush1.bf16.msra.mxu0 %v2062_v25  ;;  %1830 = vmatprep.subr.bf16.mxu1 %v1829_v56 }
 0x16d   :  { %1218 = vmatmul.mubr.bf16.vlgmr.msra.gmra.mrb[4].mxu0 %v744_v26 }
 0x240   :  { %v1219_v37 = vpop.f32.mrb[4].mxu0 }
 0x241   :  { %v1849_v38 = vadd.f32 %v1219_v37, %v815_v34  ;;  %v1221_v39 = vpop.f32.mrb[5].mxu0 }
 0x242   :  { %v1850_v40 = vadd.f32 %v1221_v39, %v819_v36  ;;  %v1223_v35 = vpop.f32.mrb[6].mxu0 }
 0x243   :  { %v1851_v41 = vadd.f32 %v1223_v35, %v815_v34  ;;  %v1225_v42 = vpop.f32.mrb[7].mxu0  ;;  %v1228_v50 = vmax.f32 %v1849_v38, 0.0 }
 0x244   :  { %v1852_v49 = vadd.f32 %v1225_v42, %v819_v36  ;;  %v1229_v52 = vmax.f32 %v1850_v40, 0.0 }
 0x245   :  { %v1230_v51 = vmax.f32 %v1851_v41, 0.0 }
 0x246   :  { %v1231_v53 = vmax.f32 %v1852_v49, 0.0 }
 0x247   :  { %v1232_v54 = vpack.c.bf16 %v1230_v51, %v1228_v50 }
 0x248   :  { %v1233_v55 = vpack.c.bf16 %v1231_v53, %v1229_v52 }
 0x24a   :  { %1401 = vmatprep.mubr.bf16.mxu1 %v1233_v55 }
 0x24b   :  { %1402 = vmatmul.mubr.bf16.vlgmr.msra.gmra.mrb[8].mxu1 %v1232_v54 }
 0x24c   :  { %1832 = vmatpush3.bf16.msra.mxu1 %v1829_v56 }
 0x24d   :  { %1834 = vmatprep.subr.bf16.mxu1 %v1833_v59 }
 0x250   :  { %1836 = vmatpush3.bf16.msra.mxu1 %v1833_v59 }
 0x251   :  { %1838 = vmatprep.subr.bf16.mxu1 %v1837_v1 }
 0x31e   :  { %v1789_v4 = vpop.f32.mrb[8].mxu1 }
 0x31f   :  { %v1790_v6 = vpop.f32.mrb[9].mxu1 }
 0x320   :  { %v1791_v9 = vadd.f32 %v1790_v6, %v1789_v4  ;;  %v1792_v10 = vpop.f32.mrb[10].mxu1 }
 0x321   :  { %v1793_v11 = vpop.f32.mrb[11].mxu1 }
 0x322   :  { %v1404_v12 = vadd.f32 %v1791_v9, %v1743_v5  ;;  %v1794_v32 = vadd.f32 %v1793_v11, %v1792_v10 }
 0x324   :  { %v1410_v33 = vmax.f32 %v1404_v12, 0.0  ;;  %v1407_v15 = vadd.f32 %v1794_v32, %v1743_v5 }
 0x326   :  { %v1411_v18 = vmax.f32 %v1407_v15, 0.0  ;;  %1815 = vmatprep.mubr.msk.f32.mxu1 %vm1432_vm0, %v1410_v33 }
 0x328   :  { %1816 = vmatmul.mubr.msk.f32.vlgmr.msra.gmra.mrb[12].mxu1 %vm1432_vm0, %v1411_v18 }
 0x329   :  { %1840 = vmatpush3.bf16.msra.mxu1 %v1837_v1  ;;  %1826 = vmatprep.mubr.msk.f32.mxu1 %vm1432_vm0, %v1422_v47 }
 0x32a   :  { %1842 = vmatprep.subr.bf16.mxu1 %v1841_v19 }
 0x32d   :  { %1844 = vmatpush3.bf16.msra.mxu1 %v1841_v19 }
 0x330   :  { %1827 = vmatmul.mubr.msk.f32.vlgmr.msra.gmra.mrb[12].mxu1 %vm1432_vm0, %v1423_v20 }
 0x403   :  { %v1828_v22 = vpop.f32.mrb[12].mxu1 }
 0x404   :  { %v1603_v23 = vadd.f32 %v1828_v22, %v1764_v21  ;;  %v1586_v43 = vpop.f32.mrb[13].mxu1 }
 0x405   :  { %v1602_v24 = vadd.f32 %v1764_v21, %v1586_v43 }
 0x406   :  { %1606 = vst.msk [vmem:[%s2537_s16 + $0x8] sm:$0xff] %vm1604_vm1, %v1603_v23 }
 0x407   :  { %1605 = vst.msk [vmem:[%s2537_s16] sm:$0xff] %vm1604_vm1, %v1602_v24 }
 0x408   :  { %1611 = vsyncpa [#allocation3], 1 }
 0x409   :  { %1612 = vsyncpa [#allocation5], 1 }

</bundles_post_ra>
